<compile_context>
chip_gen: v5e
topology: v5e:2x2
jax: 0.10.0
libtpu: 0.0.40
codegen_flags: <defaults>
</compile_context>

<pallas_src>
import jax
import jax.numpy as jnp
from jax.experimental import pallas as pl
from jax.experimental.pallas import tpu as pltpu


def _round_up(x, m):
    return (x + m - 1) // m * m


def _choose_block_b(B, row_bytes, *, target=512, vmem_budget=24 << 20):
    """Pick the batch-block size.

    * multiple of 8 (f32 sublane tile) unless the block covers the whole batch,
    * as large as possible (mem-bound: bigger tiles -> closer to HBM roofline),
    * capped so double-buffered blocks stay within `vmem_budget` (safe on the
      default scoped-VMEM limits of v5e/v6e/v7x),
    * if more than one grid step is needed, prefer an EVEN step count so v7x's
      two TensorCores get balanced halves of the "parallel" grid axis.
    """
    cap = max(8, int(vmem_budget // max(row_bytes, 1)) // 8 * 8)
    bb_max = min(target, cap)
    if B <= bb_max:
        return B                      # single block == full batch dim
    bb = max(8, bb_max // 8 * 8)
    n = -(-B // bb)
    if n > 1 and n % 2 == 1:          # balance v7x dual TensorCores
        bb2 = max(8, _round_up(-(-B // (n + 1)), 8))
        if -(-B // bb2) % 2 == 0:
            bb = bb2
    return bb


def observation_combiner(map_sequence, ego, agents, params, *,
                         block_b=None, out_dtype=None):
    """params: We/Wm/Wa as [d_in, d_model]; be/bm/ba as [d_model] or [1, d_model]."""
    B, L, d_map = map_sequence.shape
    B_e, d_ego = ego.shape
    assert B_e == B, "batch mismatch between map_sequence and ego"
    # agents.view(B, A, -1): flatten everything after the agent axis.
    agents2 = agents.reshape(agents.shape[0], agents.shape[1], -1)
    A, d_agent = agents2.shape[1], agents2.shape[2]
    d_model = params["We"].shape[1]
    T = 1 + L + A
    out_dtype = jnp.dtype(out_dtype) if out_dtype is not None else jnp.dtype(
        map_sequence.dtype)

    # Lane-dense 2-D inputs (contiguous reshapes -> free, no data movement).
    map_flat = map_sequence.reshape(B, L * d_map)
    ag_flat = agents2.reshape(B, A * d_agent)

    # Biases robustly 2-D [1, d_model] (1-D params would break the BlockSpec).
    be = jnp.reshape(params["be"], (1, d_model))
    bm = jnp.reshape(params["bm"], (1, d_model))
    ba = jnp.reshape(params["ba"], (1, d_model))
    assert params["Wm"].shape == (d_map, d_model)
    assert params["Wa"].shape == (d_agent, d_model)

    # Approximate double-buffered VMEM bytes per batch row (inputs lane-pad to
    # multiples of 128; output slab is exactly T*d_model lanes).
    lanes_in = (_round_up(d_ego, 128) + _round_up(L * d_map, 128)
                + _round_up(A * d_agent, 128))
    row_bytes = 2 * 4 * lanes_in + 2 * out_dtype.itemsize * T * d_model

    if block_b is None:
        Bb = _choose_block_b(B, row_bytes)
    else:
        Bb = int(block_b)
        Bb = B if Bb >= B else max(8, Bb // 8 * 8)   # keep (8,128) sublane rule
    n_blocks = pl.cdiv(B, Bb)

    # Generous but generation-safe scoped-VMEM ceiling (v7x physical is 64 MiB).
    vmem_limit = int(min(max(2 * Bb * row_bytes, 32 << 20), 48 << 20))

    def kernel(ego_ref, map_ref, ag_ref,
               we_ref, be_ref, wm_ref, bm_ref, wa_ref, ba_ref, o_ref):
        def emit(tok, x, b_ref):
            # Lane offset tok*d_model is a multiple of 128 -> unmasked store.
            o_ref[:, tok * d_model:(tok + 1) * d_model] = (
                jnp.maximum(x + b_ref[...], 0.0).astype(o_ref.dtype))

        # Token 0: ego.
        emit(0,
             jnp.dot(ego_ref[...], we_ref[...],
                     preferred_element_type=jnp.float32),
             be_ref)
        # Tokens 1 .. L: map, one K=d_map matmul per static lane slice.
        for l in range(L):
            x = jnp.dot(map_ref[:, l * d_map:(l + 1) * d_map], wm_ref[...],
                        preferred_element_type=jnp.float32)
            emit(1 + l, x, bm_ref)
        # Tokens 1+L .. T-1: agents.
        for a in range(A):
            x = jnp.dot(ag_ref[:, a * d_agent:(a + 1) * d_agent], wa_ref[...],
                        preferred_element_type=jnp.float32)
            emit(1 + L + a, x, ba_ref)

    rep = lambda i: (0, 0)  # weights / biases replicated across grid steps

    out_flat = pl.pallas_call(
        kernel,
        out_shape=jax.ShapeDtypeStruct((B, T * d_model), out_dtype),
        grid=(n_blocks,),
        in_specs=[
            pl.BlockSpec((Bb, d_ego), lambda i: (i, 0)),
            pl.BlockSpec((Bb, L * d_map), lambda i: (i, 0)),
            pl.BlockSpec((Bb, A * d_agent), lambda i: (i, 0)),
            pl.BlockSpec((d_ego, d_model), rep),
            pl.BlockSpec((1, d_model), rep),
            pl.BlockSpec((d_map, d_model), rep),
            pl.BlockSpec((1, d_model), rep),
            pl.BlockSpec((d_agent, d_model), rep),
            pl.BlockSpec((1, d_model), rep),
        ],
        out_specs=pl.BlockSpec((Bb, T * d_model), lambda i: (i, 0)),
        compiler_params=pltpu.CompilerParams(
            dimension_semantics=("parallel",),
            vmem_limit_bytes=vmem_limit),
    )(ego, map_flat, ag_flat,
      params["We"], be, params["Wm"], bm, params["Wa"], ba)

    # Free reshape of the contiguous [B, T*d_model] slab back to [B, T, d_model].
    return out_flat.reshape(B, T, d_model)


def _reference(map_sequence, ego, agents, params):
    """Plain-JAX reference mirroring the PyTorch forward."""
    d_model = params["We"].shape[1]
    be = params["be"].reshape(1, d_model)
    bm = params["bm"].reshape(1, d_model)
    ba = params["ba"].reshape(1, d_model)
    agents2 = agents.reshape(agents.shape[0], agents.shape[1], -1)
    x0 = jnp.maximum(ego @ params["We"] + be, 0.0)[:, None, :]
    x1 = jnp.maximum(map_sequence @ params["Wm"] + bm, 0.0)
    x2 = jnp.maximum(agents2 @ params["Wa"] + ba, 0.0)
    return jnp.concatenate([x0, x1, x2], axis=1)


if __name__ == "__main__":
    # Small shapes consistent with the module's forward; d_model=128 keeps the
    # output stores lane-dense, L*d_map=128 makes the map block exactly one
    # lane slab.
    B, L, A = 24, 8, 4
    d_map, d_ego, d_agent = 16, 12, 6
    d_model = 128
    T = 1 + L + A

    key = jax.random.PRNGKey(0)
    k = iter(jax.random.split(key, 16))

    # EmbeddingConfig(hidden=()) -> one FC with relu per input stream.
    params = {
        "We": 0.1 * jax.random.normal(next(k), (d_ego, d_model), jnp.float32),
        "be": 0.1 * jax.random.normal(next(k), (1, d_model), jnp.float32),
        "Wm": 0.1 * jax.random.normal(next(k), (d_map, d_model), jnp.float32),
        "bm": 0.1 * jax.random.normal(next(k), (1, d_model), jnp.float32),
        "Wa": 0.1 * jax.random.normal(next(k), (d_agent, d_model), jnp.float32),
        "ba": 0.1 * jax.random.normal(next(k), (1, d_model), jnp.float32),
    }

    map_sequence = jax.random.normal(next(k), (B, L, d_map), jnp.float32)
    ego = jax.random.normal(next(k), (B, d_ego), jnp.float32)
    agents = jax.random.normal(next(k), (B, A, d_agent), jnp.float32)

    ref = _reference(map_sequence, ego, agents, params)

    # 1) Default block choice (single block covering the whole small batch).
    out = jax.block_until_ready(
        observation_combiner(map_sequence, ego, agents, params))
    assert out.shape == (B, T, d_model), out.shape
    assert jnp.allclose(out, ref, atol=1e-5, rtol=1e-5), "mismatch (default Bb)"

    # 2) Multi-step pipelined grid (3 blocks of 8 rows).
    out2 = jax.block_until_ready(
        observation_combiner(map_sequence, ego, agents, params, block_b=8))
    assert jnp.allclose(out2, ref, atol=1e-5, rtol=1e-5), "mismatch (Bb=8)"

    # 3) Non-divisible boundary block (2 blocks of 16 rows; last block half
    #    out-of-bounds -> masked write-back, no wrapper pad/slice copies).
    out3 = jax.block_until_ready(
        observation_combiner(map_sequence, ego, agents, params, block_b=16))
    assert jnp.allclose(out3, ref, atol=1e-5, rtol=1e-5), "mismatch (Bb=16)"

    print("KERNEL_OK")
</pallas_src>

<mosaic_0001>
module attributes {stable_mosaic.version = 11 : i64} {
  func.func @kernel(%arg0: i32, %arg1: memref<24x12xf32, #tpu.memory_space<vmem>>, %arg2: memref<24x128xf32, #tpu.memory_space<vmem>>, %arg3: memref<24x24xf32, #tpu.memory_space<vmem>>, %arg4: memref<12x128xf32, #tpu.memory_space<vmem>>, %arg5: memref<1x128xf32, #tpu.memory_space<vmem>>, %arg6: memref<16x128xf32, #tpu.memory_space<vmem>>, %arg7: memref<1x128xf32, #tpu.memory_space<vmem>>, %arg8: memref<6x128xf32, #tpu.memory_space<vmem>>, %arg9: memref<1x128xf32, #tpu.memory_space<vmem>>, %arg10: memref<24x1664xf32, #tpu.memory_space<vmem>>) attributes {dimension_semantics = [#tpu.dimension_semantics<parallel>], iteration_bounds = array<i64: 1>, scalar_prefetch = 0 : i64, scratch_operands = 0 : i64, tpu.core_type = #tpu.core_type<tc>, window_params = [{transform_indices = @transform_0, window_bounds = array<i64: 24, 12>}, {transform_indices = @transform_1, window_bounds = array<i64: 24, 128>}, {transform_indices = @transform_2, window_bounds = array<i64: 24, 24>}, {pipeline_mode = #tpu.pipeline_mode<synchronous>, transform_indices = @transform_3, window_bounds = array<i64: 12, 128>}, {pipeline_mode = #tpu.pipeline_mode<synchronous>, transform_indices = @transform_4, window_bounds = array<i64: 1, 128>}, {pipeline_mode = #tpu.pipeline_mode<synchronous>, transform_indices = @transform_5, window_bounds = array<i64: 16, 128>}, {pipeline_mode = #tpu.pipeline_mode<synchronous>, transform_indices = @transform_6, window_bounds = array<i64: 1, 128>}, {pipeline_mode = #tpu.pipeline_mode<synchronous>, transform_indices = @transform_7, window_bounds = array<i64: 6, 128>}, {pipeline_mode = #tpu.pipeline_mode<synchronous>, transform_indices = @transform_8, window_bounds = array<i64: 1, 128>}, {transform_indices = @transform_9, window_bounds = array<i64: 24, 1664>}]} {
    %c0 = arith.constant 0 : index
    %c0_0 = arith.constant 0 : index
    %0 = vector.load %arg1[%c0, %c0_0] : memref<24x12xf32, #tpu.memory_space<vmem>>, vector<24x12xf32>
    %c0_1 = arith.constant 0 : index
    %c0_2 = arith.constant 0 : index
    %1 = vector.load %arg4[%c0_1, %c0_2] : memref<12x128xf32, #tpu.memory_space<vmem>>, vector<12x128xf32>
    %cst = arith.constant dense<0.000000e+00> : vector<24x128xf32>
    %2 = tpu.matmul %0, %1, %cst {dimension_numbers = #tpu.dot_dimension_numbers<[1], [0], [0], [1], [0, 0, 1, 1], [], []>} : vector<24x12xf32>, vector<12x128xf32>, vector<24x128xf32> -> vector<24x128xf32>
    %c0_3 = arith.constant 0 : index
    %c0_4 = arith.constant 0 : index
    %3 = vector.load %arg5[%c0_3, %c0_4] : memref<1x128xf32, #tpu.memory_space<vmem>>, vector<1x128xf32>
    %4 = vector.broadcast %3 : vector<1x128xf32> to vector<24x128xf32>
    %5 = arith.addf %2, %4 : vector<24x128xf32>
    %cst_5 = arith.constant 0.000000e+00 : f32
    %6 = vector.broadcast %cst_5 : f32 to vector<24x128xf32>
    %7 = arith.maximumf %5, %6 : vector<24x128xf32>
    %c0_6 = arith.constant 0 : index
    %c0_7 = arith.constant 0 : index
    %8 = vector.load %arg10[%c0_6, %c0_7] : memref<24x1664xf32, #tpu.memory_space<vmem>>, vector<24x128xf32>
    tpu.vector_store %arg10[%c0_6, %c0_7], %7 {strides = array<i32>} : memref<24x1664xf32, #tpu.memory_space<vmem>>, vector<24x128xf32>,
    %c0_8 = arith.constant 0 : index
    %c0_9 = arith.constant 0 : index
    %9 = vector.load %arg2[%c0_8, %c0_9] : memref<24x128xf32, #tpu.memory_space<vmem>>, vector<24x16xf32>
    %c0_10 = arith.constant 0 : index
    %c0_11 = arith.constant 0 : index
    %10 = vector.load %arg6[%c0_10, %c0_11] : memref<16x128xf32, #tpu.memory_space<vmem>>, vector<16x128xf32>
    %cst_12 = arith.constant dense<0.000000e+00> : vector<24x128xf32>
    %11 = tpu.matmul %9, %10, %cst_12 {dimension_numbers = #tpu.dot_dimension_numbers<[1], [0], [0], [1], [0, 0, 1, 1], [], []>} : vector<24x16xf32>, vector<16x128xf32>, vector<24x128xf32> -> vector<24x128xf32>
    %c0_13 = arith.constant 0 : index
    %c0_14 = arith.constant 0 : index
    %12 = vector.load %arg7[%c0_13, %c0_14] : memref<1x128xf32, #tpu.memory_space<vmem>>, vector<1x128xf32>
    %13 = vector.broadcast %12 : vector<1x128xf32> to vector<24x128xf32>
    %14 = arith.addf %11, %13 : vector<24x128xf32>
    %cst_15 = arith.constant 0.000000e+00 : f32
    %15 = vector.broadcast %cst_15 : f32 to vector<24x128xf32>
    %16 = arith.maximumf %14, %15 : vector<24x128xf32>
    %c0_16 = arith.constant 0 : index
    %c128 = arith.constant 128 : index
    %17 = vector.load %arg10[%c0_16, %c128] : memref<24x1664xf32, #tpu.memory_space<vmem>>, vector<24x128xf32>
    tpu.vector_store %arg10[%c0_16, %c128], %16 {strides = array<i32>} : memref<24x1664xf32, #tpu.memory_space<vmem>>, vector<24x128xf32>,
    %c0_17 = arith.constant 0 : index
    %c16 = arith.constant 16 : index
    %18 = vector.load %arg2[%c0_17, %c16] : memref<24x128xf32, #tpu.memory_space<vmem>>, vector<24x16xf32>
    %c0_18 = arith.constant 0 : index
    %c0_19 = arith.constant 0 : index
    %19 = vector.load %arg6[%c0_18, %c0_19] : memref<16x128xf32, #tpu.memory_space<vmem>>, vector<16x128xf32>
    %cst_20 = arith.constant dense<0.000000e+00> : vector<24x128xf32>
    %20 = tpu.matmul %18, %19, %cst_20 {dimension_numbers = #tpu.dot_dimension_numbers<[1], [0], [0], [1], [0, 0, 1, 1], [], []>} : vector<24x16xf32>, vector<16x128xf32>, vector<24x128xf32> -> vector<24x128xf32>
    %c0_21 = arith.constant 0 : index
    %c0_22 = arith.constant 0 : index
    %21 = vector.load %arg7[%c0_21, %c0_22] : memref<1x128xf32, #tpu.memory_space<vmem>>, vector<1x128xf32>
    %22 = vector.broadcast %21 : vector<1x128xf32> to vector<24x128xf32>
    %23 = arith.addf %20, %22 : vector<24x128xf32>
    %cst_23 = arith.constant 0.000000e+00 : f32
    %24 = vector.broadcast %cst_23 : f32 to vector<24x128xf32>
    %25 = arith.maximumf %23, %24 : vector<24x128xf32>
    %c0_24 = arith.constant 0 : index
    %c256 = arith.constant 256 : index
    %26 = vector.load %arg10[%c0_24, %c256] : memref<24x1664xf32, #tpu.memory_space<vmem>>, vector<24x128xf32>
    tpu.vector_store %arg10[%c0_24, %c256], %25 {strides = array<i32>} : memref<24x1664xf32, #tpu.memory_space<vmem>>, vector<24x128xf32>,
    %c0_25 = arith.constant 0 : index
    %c32 = arith.constant 32 : index
    %27 = vector.load %arg2[%c0_25, %c32] : memref<24x128xf32, #tpu.memory_space<vmem>>, vector<24x16xf32>
    %c0_26 = arith.constant 0 : index
    %c0_27 = arith.constant 0 : index
    %28 = vector.load %arg6[%c0_26, %c0_27] : memref<16x128xf32, #tpu.memory_space<vmem>>, vector<16x128xf32>
    %cst_28 = arith.constant dense<0.000000e+00> : vector<24x128xf32>
    %29 = tpu.matmul %27, %28, %cst_28 {dimension_numbers = #tpu.dot_dimension_numbers<[1], [0], [0], [1], [0, 0, 1, 1], [], []>} : vector<24x16xf32>, vector<16x128xf32>, vector<24x128xf32> -> vector<24x128xf32>
    %c0_29 = arith.constant 0 : index
    %c0_30 = arith.constant 0 : index
    %30 = vector.load %arg7[%c0_29, %c0_30] : memref<1x128xf32, #tpu.memory_space<vmem>>, vector<1x128xf32>
    %31 = vector.broadcast %30 : vector<1x128xf32> to vector<24x128xf32>
    %32 = arith.addf %29, %31 : vector<24x128xf32>
    %cst_31 = arith.constant 0.000000e+00 : f32
    %33 = vector.broadcast %cst_31 : f32 to vector<24x128xf32>
    %34 = arith.maximumf %32, %33 : vector<24x128xf32>
    %c0_32 = arith.constant 0 : index
    %c384 = arith.constant 384 : index
    %35 = vector.load %arg10[%c0_32, %c384] : memref<24x1664xf32, #tpu.memory_space<vmem>>, vector<24x128xf32>
    tpu.vector_store %arg10[%c0_32, %c384], %34 {strides = array<i32>} : memref<24x1664xf32, #tpu.memory_space<vmem>>, vector<24x128xf32>,
    %c0_33 = arith.constant 0 : index
    %c48 = arith.constant 48 : index
    %36 = vector.load %arg2[%c0_33, %c48] : memref<24x128xf32, #tpu.memory_space<vmem>>, vector<24x16xf32>
    %c0_34 = arith.constant 0 : index
    %c0_35 = arith.constant 0 : index
    %37 = vector.load %arg6[%c0_34, %c0_35] : memref<16x128xf32, #tpu.memory_space<vmem>>, vector<16x128xf32>
    %cst_36 = arith.constant dense<0.000000e+00> : vector<24x128xf32>
    %38 = tpu.matmul %36, %37, %cst_36 {dimension_numbers = #tpu.dot_dimension_numbers<[1], [0], [0], [1], [0, 0, 1, 1], [], []>} : vector<24x16xf32>, vector<16x128xf32>, vector<24x128xf32> -> vector<24x128xf32>
    %c0_37 = arith.constant 0 : index
    %c0_38 = arith.constant 0 : index
    %39 = vector.load %arg7[%c0_37, %c0_38] : memref<1x128xf32, #tpu.memory_space<vmem>>, vector<1x128xf32>
    %40 = vector.broadcast %39 : vector<1x128xf32> to vector<24x128xf32>
    %41 = arith.addf %38, %40 : vector<24x128xf32>
    %cst_39 = arith.constant 0.000000e+00 : f32
    %42 = vector.broadcast %cst_39 : f32 to vector<24x128xf32>
    %43 = arith.maximumf %41, %42 : vector<24x128xf32>
    %c0_40 = arith.constant 0 : index
    %c512 = arith.constant 512 : index
    %44 = vector.load %arg10[%c0_40, %c512] : memref<24x1664xf32, #tpu.memory_space<vmem>>, vector<24x128xf32>
    tpu.vector_store %arg10[%c0_40, %c512], %43 {strides = array<i32>} : memref<24x1664xf32, #tpu.memory_space<vmem>>, vector<24x128xf32>,
    %c0_41 = arith.constant 0 : index
    %c64 = arith.constant 64 : index
    %45 = vector.load %arg2[%c0_41, %c64] : memref<24x128xf32, #tpu.memory_space<vmem>>, vector<24x16xf32>
    %c0_42 = arith.constant 0 : index
    %c0_43 = arith.constant 0 : index
    %46 = vector.load %arg6[%c0_42, %c0_43] : memref<16x128xf32, #tpu.memory_space<vmem>>, vector<16x128xf32>
    %cst_44 = arith.constant dense<0.000000e+00> : vector<24x128xf32>
    %47 = tpu.matmul %45, %46, %cst_44 {dimension_numbers = #tpu.dot_dimension_numbers<[1], [0], [0], [1], [0, 0, 1, 1], [], []>} : vector<24x16xf32>, vector<16x128xf32>, vector<24x128xf32> -> vector<24x128xf32>
    %c0_45 = arith.constant 0 : index
    %c0_46 = arith.constant 0 : index
    %48 = vector.load %arg7[%c0_45, %c0_46] : memref<1x128xf32, #tpu.memory_space<vmem>>, vector<1x128xf32>
    %49 = vector.broadcast %48 : vector<1x128xf32> to vector<24x128xf32>
    %50 = arith.addf %47, %49 : vector<24x128xf32>
    %cst_47 = arith.constant 0.000000e+00 : f32
    %51 = vector.broadcast %cst_47 : f32 to vector<24x128xf32>
    %52 = arith.maximumf %50, %51 : vector<24x128xf32>
    %c0_48 = arith.constant 0 : index
    %c640 = arith.constant 640 : index
    %53 = vector.load %arg10[%c0_48, %c640] : memref<24x1664xf32, #tpu.memory_space<vmem>>, vector<24x128xf32>
    tpu.vector_store %arg10[%c0_48, %c640], %52 {strides = array<i32>} : memref<24x1664xf32, #tpu.memory_space<vmem>>, vector<24x128xf32>,
    %c0_49 = arith.constant 0 : index
    %c80 = arith.constant 80 : index
    %54 = vector.load %arg2[%c0_49, %c80] : memref<24x128xf32, #tpu.memory_space<vmem>>, vector<24x16xf32>
    %c0_50 = arith.constant 0 : index
    %c0_51 = arith.constant 0 : index
    %55 = vector.load %arg6[%c0_50, %c0_51] : memref<16x128xf32, #tpu.memory_space<vmem>>, vector<16x128xf32>
    %cst_52 = arith.constant dense<0.000000e+00> : vector<24x128xf32>
    %56 = tpu.matmul %54, %55, %cst_52 {dimension_numbers = #tpu.dot_dimension_numbers<[1], [0], [0], [1], [0, 0, 1, 1], [], []>} : vector<24x16xf32>, vector<16x128xf32>, vector<24x128xf32> -> vector<24x128xf32>
    %c0_53 = arith.constant 0 : index
    %c0_54 = arith.constant 0 : index
    %57 = vector.load %arg7[%c0_53, %c0_54] : memref<1x128xf32, #tpu.memory_space<vmem>>, vector<1x128xf32>
    %58 = vector.broadcast %57 : vector<1x128xf32> to vector<24x128xf32>
    %59 = arith.addf %56, %58 : vector<24x128xf32>
    %cst_55 = arith.constant 0.000000e+00 : f32
    %60 = vector.broadcast %cst_55 : f32 to vector<24x128xf32>
    %61 = arith.maximumf %59, %60 : vector<24x128xf32>
    %c0_56 = arith.constant 0 : index
    %c768 = arith.constant 768 : index
    %62 = vector.load %arg10[%c0_56, %c768] : memref<24x1664xf32, #tpu.memory_space<vmem>>, vector<24x128xf32>
    tpu.vector_store %arg10[%c0_56, %c768], %61 {strides = array<i32>} : memref<24x1664xf32, #tpu.memory_space<vmem>>, vector<24x128xf32>,
    %c0_57 = arith.constant 0 : index
    %c96 = arith.constant 96 : index
    %63 = vector.load %arg2[%c0_57, %c96] : memref<24x128xf32, #tpu.memory_space<vmem>>, vector<24x16xf32>
    %c0_58 = arith.constant 0 : index
    %c0_59 = arith.constant 0 : index
    %64 = vector.load %arg6[%c0_58, %c0_59] : memref<16x128xf32, #tpu.memory_space<vmem>>, vector<16x128xf32>
    %cst_60 = arith.constant dense<0.000000e+00> : vector<24x128xf32>
    %65 = tpu.matmul %63, %64, %cst_60 {dimension_numbers = #tpu.dot_dimension_numbers<[1], [0], [0], [1], [0, 0, 1, 1], [], []>} : vector<24x16xf32>, vector<16x128xf32>, vector<24x128xf32> -> vector<24x128xf32>
    %c0_61 = arith.constant 0 : index
    %c0_62 = arith.constant 0 : index
    %66 = vector.load %arg7[%c0_61, %c0_62] : memref<1x128xf32, #tpu.memory_space<vmem>>, vector<1x128xf32>
    %67 = vector.broadcast %66 : vector<1x128xf32> to vector<24x128xf32>
    %68 = arith.addf %65, %67 : vector<24x128xf32>
    %cst_63 = arith.constant 0.000000e+00 : f32
    %69 = vector.broadcast %cst_63 : f32 to vector<24x128xf32>
    %70 = arith.maximumf %68, %69 : vector<24x128xf32>
    %c0_64 = arith.constant 0 : index
    %c896 = arith.constant 896 : index
    %71 = vector.load %arg10[%c0_64, %c896] : memref<24x1664xf32, #tpu.memory_space<vmem>>, vector<24x128xf32>
    tpu.vector_store %arg10[%c0_64, %c896], %70 {strides = array<i32>} : memref<24x1664xf32, #tpu.memory_space<vmem>>, vector<24x128xf32>,
    %c0_65 = arith.constant 0 : index
    %c112 = arith.constant 112 : index
    %72 = vector.load %arg2[%c0_65, %c112] : memref<24x128xf32, #tpu.memory_space<vmem>>, vector<24x16xf32>
    %c0_66 = arith.constant 0 : index
    %c0_67 = arith.constant 0 : index
    %73 = vector.load %arg6[%c0_66, %c0_67] : memref<16x128xf32, #tpu.memory_space<vmem>>, vector<16x128xf32>
    %cst_68 = arith.constant dense<0.000000e+00> : vector<24x128xf32>
    %74 = tpu.matmul %72, %73, %cst_68 {dimension_numbers = #tpu.dot_dimension_numbers<[1], [0], [0], [1], [0, 0, 1, 1], [], []>} : vector<24x16xf32>, vector<16x128xf32>, vector<24x128xf32> -> vector<24x128xf32>
    %c0_69 = arith.constant 0 : index
    %c0_70 = arith.constant 0 : index
    %75 = vector.load %arg7[%c0_69, %c0_70] : memref<1x128xf32, #tpu.memory_space<vmem>>, vector<1x128xf32>
    %76 = vector.broadcast %75 : vector<1x128xf32> to vector<24x128xf32>
    %77 = arith.addf %74, %76 : vector<24x128xf32>
    %cst_71 = arith.constant 0.000000e+00 : f32
    %78 = vector.broadcast %cst_71 : f32 to vector<24x128xf32>
    %79 = arith.maximumf %77, %78 : vector<24x128xf32>
    %c0_72 = arith.constant 0 : index
    %c1024 = arith.constant 1024 : index
    %80 = vector.load %arg10[%c0_72, %c1024] : memref<24x1664xf32, #tpu.memory_space<vmem>>, vector<24x128xf32>
    tpu.vector_store %arg10[%c0_72, %c1024], %79 {strides = array<i32>} : memref<24x1664xf32, #tpu.memory_space<vmem>>, vector<24x128xf32>,
    %c0_73 = arith.constant 0 : index
    %c0_74 = arith.constant 0 : index
    %81 = vector.load %arg3[%c0_73, %c0_74] : memref<24x24xf32, #tpu.memory_space<vmem>>, vector<24x6xf32>
    %c0_75 = arith.constant 0 : index
    %c0_76 = arith.constant 0 : index
    %82 = vector.load %arg8[%c0_75, %c0_76] : memref<6x128xf32, #tpu.memory_space<vmem>>, vector<6x128xf32>
    %cst_77 = arith.constant dense<0.000000e+00> : vector<24x128xf32>
    %83 = tpu.matmul %81, %82, %cst_77 {dimension_numbers = #tpu.dot_dimension_numbers<[1], [0], [0], [1], [0, 0, 1, 1], [], []>} : vector<24x6xf32>, vector<6x128xf32>, vector<24x128xf32> -> vector<24x128xf32>
    %c0_78 = arith.constant 0 : index
    %c0_79 = arith.constant 0 : index
    %84 = vector.load %arg9[%c0_78, %c0_79] : memref<1x128xf32, #tpu.memory_space<vmem>>, vector<1x128xf32>
    %85 = vector.broadcast %84 : vector<1x128xf32> to vector<24x128xf32>
    %86 = arith.addf %83, %85 : vector<24x128xf32>
    %cst_80 = arith.constant 0.000000e+00 : f32
    %87 = vector.broadcast %cst_80 : f32 to vector<24x128xf32>
    %88 = arith.maximumf %86, %87 : vector<24x128xf32>
    %c0_81 = arith.constant 0 : index
    %c1152 = arith.constant 1152 : index
    %89 = vector.load %arg10[%c0_81, %c1152] : memref<24x1664xf32, #tpu.memory_space<vmem>>, vector<24x128xf32>
    tpu.vector_store %arg10[%c0_81, %c1152], %88 {strides = array<i32>} : memref<24x1664xf32, #tpu.memory_space<vmem>>, vector<24x128xf32>,
    %c0_82 = arith.constant 0 : index
    %c6 = arith.constant 6 : index
    %90 = vector.load %arg3[%c0_82, %c6] : memref<24x24xf32, #tpu.memory_space<vmem>>, vector<24x6xf32>
    %c0_83 = arith.constant 0 : index
    %c0_84 = arith.constant 0 : index
    %91 = vector.load %arg8[%c0_83, %c0_84] : memref<6x128xf32, #tpu.memory_space<vmem>>, vector<6x128xf32>
    %cst_85 = arith.constant dense<0.000000e+00> : vector<24x128xf32>
    %92 = tpu.matmul %90, %91, %cst_85 {dimension_numbers = #tpu.dot_dimension_numbers<[1], [0], [0], [1], [0, 0, 1, 1], [], []>} : vector<24x6xf32>, vector<6x128xf32>, vector<24x128xf32> -> vector<24x128xf32>
    %c0_86 = arith.constant 0 : index
    %c0_87 = arith.constant 0 : index
    %93 = vector.load %arg9[%c0_86, %c0_87] : memref<1x128xf32, #tpu.memory_space<vmem>>, vector<1x128xf32>
    %94 = vector.broadcast %93 : vector<1x128xf32> to vector<24x128xf32>
    %95 = arith.addf %92, %94 : vector<24x128xf32>
    %cst_88 = arith.constant 0.000000e+00 : f32
    %96 = vector.broadcast %cst_88 : f32 to vector<24x128xf32>
    %97 = arith.maximumf %95, %96 : vector<24x128xf32>
    %c0_89 = arith.constant 0 : index
    %c1280 = arith.constant 1280 : index
    %98 = vector.load %arg10[%c0_89, %c1280] : memref<24x1664xf32, #tpu.memory_space<vmem>>, vector<24x128xf32>
    tpu.vector_store %arg10[%c0_89, %c1280], %97 {strides = array<i32>} : memref<24x1664xf32, #tpu.memory_space<vmem>>, vector<24x128xf32>,
    %c0_90 = arith.constant 0 : index
    %c12 = arith.constant 12 : index
    %99 = vector.load %arg3[%c0_90, %c12] : memref<24x24xf32, #tpu.memory_space<vmem>>, vector<24x6xf32>
    %c0_91 = arith.constant 0 : index
    %c0_92 = arith.constant 0 : index
    %100 = vector.load %arg8[%c0_91, %c0_92] : memref<6x128xf32, #tpu.memory_space<vmem>>, vector<6x128xf32>
    %cst_93 = arith.constant dense<0.000000e+00> : vector<24x128xf32>
    %101 = tpu.matmul %99, %100, %cst_93 {dimension_numbers = #tpu.dot_dimension_numbers<[1], [0], [0], [1], [0, 0, 1, 1], [], []>} : vector<24x6xf32>, vector<6x128xf32>, vector<24x128xf32> -> vector<24x128xf32>
    %c0_94 = arith.constant 0 : index
    %c0_95 = arith.constant 0 : index
    %102 = vector.load %arg9[%c0_94, %c0_95] : memref<1x128xf32, #tpu.memory_space<vmem>>, vector<1x128xf32>
    %103 = vector.broadcast %102 : vector<1x128xf32> to vector<24x128xf32>
    %104 = arith.addf %101, %103 : vector<24x128xf32>
    %cst_96 = arith.constant 0.000000e+00 : f32
    %105 = vector.broadcast %cst_96 : f32 to vector<24x128xf32>
    %106 = arith.maximumf %104, %105 : vector<24x128xf32>
    %c0_97 = arith.constant 0 : index
    %c1408 = arith.constant 1408 : index
    %107 = vector.load %arg10[%c0_97, %c1408] : memref<24x1664xf32, #tpu.memory_space<vmem>>, vector<24x128xf32>
    tpu.vector_store %arg10[%c0_97, %c1408], %106 {strides = array<i32>} : memref<24x1664xf32, #tpu.memory_space<vmem>>, vector<24x128xf32>,
    %c0_98 = arith.constant 0 : index
    %c18 = arith.constant 18 : index
    %108 = vector.load %arg3[%c0_98, %c18] : memref<24x24xf32, #tpu.memory_space<vmem>>, vector<24x6xf32>
    %c0_99 = arith.constant 0 : index
    %c0_100 = arith.constant 0 : index
    %109 = vector.load %arg8[%c0_99, %c0_100] : memref<6x128xf32, #tpu.memory_space<vmem>>, vector<6x128xf32>
    %cst_101 = arith.constant dense<0.000000e+00> : vector<24x128xf32>
    %110 = tpu.matmul %108, %109, %cst_101 {dimension_numbers = #tpu.dot_dimension_numbers<[1], [0], [0], [1], [0, 0, 1, 1], [], []>} : vector<24x6xf32>, vector<6x128xf32>, vector<24x128xf32> -> vector<24x128xf32>
    %c0_102 = arith.constant 0 : index
    %c0_103 = arith.constant 0 : index
    %111 = vector.load %arg9[%c0_102, %c0_103] : memref<1x128xf32, #tpu.memory_space<vmem>>, vector<1x128xf32>
    %112 = vector.broadcast %111 : vector<1x128xf32> to vector<24x128xf32>
    %113 = arith.addf %110, %112 : vector<24x128xf32>
    %cst_104 = arith.constant 0.000000e+00 : f32
    %114 = vector.broadcast %cst_104 : f32 to vector<24x128xf32>
    %115 = arith.maximumf %113, %114 : vector<24x128xf32>
    %c0_105 = arith.constant 0 : index
    %c1536 = arith.constant 1536 : index
    %116 = vector.load %arg10[%c0_105, %c1536] : memref<24x1664xf32, #tpu.memory_space<vmem>>, vector<24x128xf32>
    tpu.vector_store %arg10[%c0_105, %c1536], %115 {strides = array<i32>} : memref<24x1664xf32, #tpu.memory_space<vmem>>, vector<24x128xf32>,
    return
  }
  func.func @transform_0(%arg0: i32) -> (i32, i32) {
    %c0_i32 = arith.constant 0 : i32
    %c0_i32_0 = arith.constant 0 : i32
    return %arg0, %c0_i32 : i32, i32
  }
  func.func @transform_1(%arg0: i32) -> (i32, i32) {
    %c0_i32 = arith.constant 0 : i32
    %c0_i32_0 = arith.constant 0 : i32
    return %arg0, %c0_i32 : i32, i32
  }
  func.func @transform_2(%arg0: i32) -> (i32, i32) {
    %c0_i32 = arith.constant 0 : i32
    %c0_i32_0 = arith.constant 0 : i32
    return %arg0, %c0_i32 : i32, i32
  }
  func.func @transform_3(%arg0: i32) -> (i32, i32) {
    %c0_i32 = arith.constant 0 : i32
    %c0_i32_0 = arith.constant 0 : i32
    %c0_i32_1 = arith.constant 0 : i32
    return %c0_i32, %c0_i32_0 : i32, i32
  }
  func.func @transform_4(%arg0: i32) -> (i32, i32) {
    %c0_i32 = arith.constant 0 : i32
    %c0_i32_0 = arith.constant 0 : i32
    %c0_i32_1 = arith.constant 0 : i32
    return %c0_i32, %c0_i32_0 : i32, i32
  }
  func.func @transform_5(%arg0: i32) -> (i32, i32) {
    %c0_i32 = arith.constant 0 : i32
    %c0_i32_0 = arith.constant 0 : i32
    %c0_i32_1 = arith.constant 0 : i32
    return %c0_i32, %c0_i32_0 : i32, i32
  }
  func.func @transform_6(%arg0: i32) -> (i32, i32) {
    %c0_i32 = arith.constant 0 : i32
    %c0_i32_0 = arith.constant 0 : i32
    %c0_i32_1 = arith.constant 0 : i32
    return %c0_i32, %c0_i32_0 : i32, i32
  }
  func.func @transform_7(%arg0: i32) -> (i32, i32) {
    %c0_i32 = arith.constant 0 : i32
    %c0_i32_0 = arith.constant 0 : i32
    %c0_i32_1 = arith.constant 0 : i32
    return %c0_i32, %c0_i32_0 : i32, i32
  }
  func.func @transform_8(%arg0: i32) -> (i32, i32) {
    %c0_i32 = arith.constant 0 : i32
    %c0_i32_0 = arith.constant 0 : i32
    %c0_i32_1 = arith.constant 0 : i32
    return %c0_i32, %c0_i32_0 : i32, i32
  }
  func.func @transform_9(%arg0: i32) -> (i32, i32) {
    %c0_i32 = arith.constant 0 : i32
    %c0_i32_0 = arith.constant 0 : i32
    return %arg0, %c0_i32 : i32, i32
  }
}

</mosaic_0001>

<bundles_post_ra>
// kernel: tpu_custom_call.1
= control target key start
LH: loop header
LB: loop body
LE: loop exit
PB: predicated region body
PF: predicated region fallthrough
CT: control target
= control target key end

     0   :  { %14 = vsyncpa [#allocation3], 0  ;;  %s1240_s0 = inlined_call_operand.vmem [shape: f32[24,12], index: 0, kind: input, shape index: {}]   ;;  %s1241_s1 = inlined_call_operand.vmem [shape: f32[24,128], index: 1, kind: input, shape index: {}]   ;;  %s1242_s2 = inlined_call_operand.hbm [shape: f32[24,24], index: 2, kind: input, shape index: {}]   ;;  %s1243_s3 = inlined_call_operand.vmem [shape: f32[12,128], index: 3, kind: input, shape index: {}]   ;;  %s1244_s4 = inlined_call_operand.vmem [shape: f32[1,128], index: 4, kind: input, shape index: {}]   ;;  %s1245_s5 = inlined_call_operand.hbm [shape: f32[16,128], index: 5, kind: input, shape index: {}]   ;;  %s1246_s6 = inlined_call_operand.vmem [shape: f32[1,128], index: 6, kind: input, shape index: {}]   ;;  %s1247_s7 = inlined_call_operand.hbm [shape: f32[6,128], index: 7, kind: input, shape index: {}]   ;;  %s1248_s8 = inlined_call_operand.vmem [shape: f32[1,128], index: 8, kind: input, shape index: {}]   ;;  %s1249_s9 = inlined_call_operand.hbm [shape: f32[24,1664], index: 9, kind: output, shape index: {}]  }
   0x1   :  { %15 = vsyncpa [#allocation6], 0 }
   0x2   :  { %16 = vsyncpa [#allocation4], 0  ;;  %s42_s11 = sshll.u32 %s1245_s5, 4  ;;  %s1005_s12 = smov [#allocation5]   ;;  %s43_s11 = int_to_ptr.hbm [resolvable:$true] %s42_s11 }
   0x3   :  { %s44_s13 = sshll.u32 %s1005_s12, 4  ;;  %s25_s16 = sshll.u32 %s1242_s2, 4  ;;  %s45_s13 = int_to_ptr.vmem [resolvable:$true] %s44_s13  ;;  %s26_s16 = int_to_ptr.hbm [resolvable:$true] %s25_s16 }
   0x4   :  { %s1006_s17 = smov 128   ;;  %s1007_s18 = smov 8  }
   0x5   :  { %50 = dma.hbm_to_vmem [thread:$0]  %s43_s11, 256, %s45_s13, [#allocation6], %s1006_s17, %s1006_s17, %s1007_s18  }
   0x6   :  { %s1008_s19 = smov [#allocation2]   ;;  %s58_s23 = sshll.u32 %s1247_s7, 4  ;;  %s59_s23 = int_to_ptr.hbm [resolvable:$true] %s58_s23 }
   0x7   :  { %s27_s20 = sshll.u32 %s1008_s19, 4  ;;  %s1009_s5 = smov [#allocation7]   ;;  %s28_s20 = int_to_ptr.vmem [resolvable:$true] %s27_s20 }
   0x8   :  { %33 = dma.hbm_to_vmem [thread:$0]  %s26_s16, 384, %s28_s20, [#allocation3], %s1006_s17, %s1006_s17, %s1007_s18  }
   0x9   :  { %s60_s24 = sshll.u32 %s1009_s5, 4  ;;  %s61_s24 = int_to_ptr.vmem [resolvable:$true] %s60_s24 }
   0xa   :  { %63 = dma.hbm_to_vmem [thread:$0]  %s59_s23, 128, %s61_s24, [#allocation6]  }
   0xb   :  { %999 = dma.done.wait [#allocation3], 384  }
   0xc   :  { %1000 = vsyncadd [#allocation3], 4294966912 }
   0xd   :  { %1001 = dma.done.wait [#allocation6], 384  }
   0xe   :  { %1002 = vsyncadd [#allocation6], 4294966912  ;;  %v1085_v0 = vld [vmem:[%s1241_s1] sm:$0xff]  ;;  %v1090_v1 = vld [vmem:[%s1241_s1 + $0x8] sm:$0xff]  ;;  %s1010_s7 = smov 80   ;;  %s1011_s28 = smov 112  }
   0xf   :  { %308 = vrot.lane.b32.xlu1 %v1085_v0, %s1010_s7  ;;  %196 = vrot.lane.b32.xlu0 %v1085_v0, %s1011_s28  ;;  %s1012_s29 = smov 96   ;;  %v1101_v2 = vld [vmem:[%s1241_s1 + $0x10] sm:$0xff]  ;;  %s1013_s11 = smov 32   ;;  %v82_v3 = vld [vmem:[%s1243_s3 + $0x8] sm:$0xf]  ;;  %vm97_vm0 = vcmask 1043456  }
  0x10   :  { %254 = vrot.lane.b32.xlu2 %v1090_v1, %s1012_s29  ;;  %s1014_s12 = smov 48   ;;  %s1015_s13 = smov 64   ;;  %v81_v4 = vld [vmem:[%s1243_s3] sm:$0xff]  ;;  %824 = vmatpush.msk.msra.mxu0 %vm97_vm0, %v82_v3  ;;  %vm87_vm1 = vcmask 97280   ;;  %v80_v6 = vld [vmem:[%s1240_s0 + $0x10] sm:$0xff]  ;;  %v79_v8 = vld [vmem:[%s1240_s0 + $0x8] sm:$0xff] }
  0x11   :  { %s1016_s1 = smov 16   ;;  %869 = vmatpush.msk.msra.mxu2 %vm97_vm0, %v82_v3  ;;  %v78_v5 = vld [vmem:[%s1240_s0] sm:$0xff]  ;;  %868 = vmatpush.msk.msra.mxu1 %vm97_vm0, %v82_v3  ;;  %s1017_s3 = smov 116   ;;  %v1141_v10 = vld [vmem:[#allocation2 + $0x8] sm:$0xff]  ;;  %v1146_v11 = vld [vmem:[#allocation2 + $0x10] sm:$0xff]  ;;  %vm142_vm2 = vcmask 130048  }
  0x12   :  { %v188_v7 = vld [vmem:[#allocation5 + $0x8] sm:$0xff]  ;;  %116 = vmatpush.msra.mxu0 %v81_v4  ;;  %s1018_s0 = smov 122   ;;  %s1019_s5 = smov 110   ;;  %v187_v12 = vld [vmem:[#allocation5] sm:$0xff]  ;;  %vm594_vm3 = vcmask 1045504   ;;  %vm584_vm4 = vcmask 48128  }
  0x13   :  { %278 = vmatpush.msra.mxu3 %v188_v7  ;;  %871 = vmatpush.msra.mxu2 %v81_v4  ;;  %v1136_v9 = vld [vmem:[#allocation2] sm:$0xff]  ;;  %v633_v19 = vld [vmem:[#allocation7] sm:$0x3f]  ;;  %s810_s24 = sshll.u32 %s1249_s9, 4  ;;  %s1021_s2 = smov 1664   ;;  %s811_s24 = int_to_ptr.hbm [resolvable:$true] %s810_s24 }
  0x14   :  { %825 = vmatmul.msk.f32.vlgmr.msra.gmra.mxu0 %vm87_vm1, %v78_v5  ;;  %827 = vmatmul.msk.f32.vlgmr.msra.gmra.mxu2 %vm87_vm1, %v80_v6  ;;  %v579_v20 = vld [vmem:[#allocation7] sm:$0x3f]  ;;  %v890_v39 = vld [vmem:[%s1244_s4] ss:$0 sm:$0xff]  ;;  %s1022_s4 = smov 104  }
  0x15   :  { %870 = vmatpush.msra.mxu1 %v81_v4  ;;  %222 = vmatpush.msrb.mxu2 %v188_v7  ;;  %v749_v21 = vld [vmem:[#allocation7] sm:$0x3f]  ;;  %v892_v57 = vld [vmem:[%s1246_s6] ss:$0 sm:$0xff] }
  0x16   :  { %334 = vmatpush.msrb.mxu0 %v188_v7  ;;  %826 = vmatmul.msk.f32.vlgmr.msra.gmra.mxu1 %vm87_vm1, %v79_v8  ;;  %v691_v22 = vld [vmem:[#allocation7] sm:$0x3f]  ;;  %v891_v3 = vld [vmem:[%s1246_s6] ss:$0 sm:$0xff] }
  0x17   :  { %198 = vrot.lane.b32.xlu1 %v1090_v1, %s1011_s28  ;;  %252 = vrot.lane.b32.xlu0 %v1085_v0, %s1012_s29  ;;  %v1205_v4 = vld [vmem:[%s1246_s6] ss:$0 sm:$0xff] }
  0x18   :  { %310 = vrot.lane.b32.xlu2 %v1090_v1, %s1010_s7  ;;  %166 = vmatpush.msrb.mxu1 %v188_v7 }
  0x19   :  { %223 = vmatpush.msrb.mxu2 %v187_v12  ;;  %335 = vmatpush.msrb.mxu0 %v187_v12 }
  0x1a   :  { %167 = vmatpush.msrb.mxu1 %v187_v12  ;;  %279 = vmatpush.msra.mxu3 %v187_v12 }
  0x1b   :  { %446 = vmatpush.msra.mxu2 %v188_v7  ;;  %558 = vmatpush.msra.mxu0 %v188_v7 }
  0x1c   :  { %502 = vmatpush.msrb.mxu3 %v188_v7  ;;  %390 = vmatpush.msra.mxu1 %v188_v7 }
  0x1d   :  { %447 = vmatpush.msra.mxu2 %v187_v12  ;;  %559 = vmatpush.msra.mxu0 %v187_v12 }
  0x1e   :  { %828 = vmatmul.msk.f32.vlgmr.msrb.gmra.mxu1 %vm142_vm2, %v1085_v0  ;;  %503 = vmatpush.msrb.mxu3 %v187_v12 }
  0x1f   :  { %256 = vrot.lane.b32.xlu1 %v1101_v2, %s1012_s29  ;;  %200 = vrot.lane.b32.xlu0 %v1101_v2, %s1011_s28 }
  0x20   :  { %312 = vrot.lane.b32.xlu2 %v1101_v2, %s1010_s7  ;;  %391 = vmatpush.msra.mxu1 %v187_v12 }
  0x22   :  { %852 = vmatpush.msk.msrb.mxu1 %vm594_vm3, %v579_v20 }
  0x26   :  { %829 = vmatmul.msk.f32.gmra.mxu1 %vm142_vm2, %v1090_v1 }
  0x27   :  { %476 = vrot.lane.b32.xlu1 %v1085_v0, %s1013_s11  ;;  %420 = vrot.lane.b32.xlu0 %v1085_v0, %s1014_s12 }
  0x28   :  { %364 = vrot.lane.b32.xlu2 %v1085_v0, %s1015_s13 }
  0x2e   :  { %830 = vmatmul.msk.f32.gmra.mxu1 %vm142_vm2, %v1101_v2 }
  0x2f   :  { %422 = vrot.lane.b32.xlu1 %v1090_v1, %s1014_s12  ;;  %532 = vrot.lane.b32.xlu0 %v1085_v0, %s1016_s1 }
  0x30   :  { %478 = vrot.lane.b32.xlu2 %v1090_v1, %s1013_s11 }
  0x37   :  { %534 = vrot.lane.b32.xlu1 %v1090_v1, %s1016_s1  ;;  %366 = vrot.lane.b32.xlu0 %v1090_v1, %s1015_s13 }
  0x38   :  { %424 = vrot.lane.b32.xlu2 %v1101_v2, %s1014_s12 }
  0x3f   :  { %368 = vrot.lane.b32.xlu1 %v1101_v2, %s1015_s13  ;;  %480 = vrot.lane.b32.xlu0 %v1101_v2, %s1013_s11 }
  0x40   :  { %536 = vrot.lane.b32.xlu2 %v1101_v2, %s1016_s1 }
  0x47   :  { %699 = vrot.lane.b32.xlu1 %v1136_v9, %s1017_s3  ;;  %641 = vrot.lane.b32.xlu0 %v1136_v9, %s1018_s0 }
  0x48   :  { %757 = vrot.lane.b32.xlu2 %v1136_v9, %s1019_s5 }
  0x4f   :  { %701 = vrot.lane.b32.xlu1 %v1141_v10, %s1017_s3  ;;  %643 = vrot.lane.b32.xlu0 %v1141_v10, %s1018_s0 }
  0x50   :  { %759 = vrot.lane.b32.xlu2 %v1141_v10, %s1019_s5 }
  0x57   :  { %703 = vrot.lane.b32.xlu1 %v1146_v11, %s1017_s3  ;;  %645 = vrot.lane.b32.xlu0 %v1146_v11, %s1018_s0 }
  0x58   :  { %761 = vrot.lane.b32.xlu2 %v1146_v11, %s1019_s5 }
  0x6a   :  { %v255_v13 = vpop.permute.xlu2 %254 }
  0x72   :  { %v311_v14 = vpop.permute.xlu2 %310 }
  0x7a   :  { %v313_v15 = vpop.permute.xlu2 %312 }
  0x81   :  { %v309_v16 = vpop.permute.xlu1 %308  ;;  %v197_v17 = vpop.permute.xlu0 %196 }
  0x82   :  { %831 = vmatmul.msk.f32.vlgmr.msrb.gmra.mxu2 %vm142_vm2, %v197_v17  ;;  %837 = vmatmul.msk.f32.vlgmr.msrb.gmra.mxu0 %vm142_vm2, %v309_v16  ;;  %v365_v18 = vpop.permute.xlu2 %364  ;;  %v894_v17 = vld [vmem:[%s1246_s6] ss:$0 sm:$0xff] }
  0x83   :  { %840 = vmatmul.msk.f32.vlgmr.msra.gmra.mxu1 %vm142_vm2, %v365_v18  ;;  %856 = vmatpush.msk.msrb.mxu2 %vm594_vm3, %v633_v19 }
  0x84   :  { %864 = vmatpush.msk.msrb.mxu0 %vm594_vm3, %v749_v21 }
  0x89   :  { %v199_v23 = vpop.permute.xlu1 %198  ;;  %v253_v24 = vpop.permute.xlu0 %252 }
  0x8a   :  { %832 = vmatmul.msk.f32.gmra.mxu2 %vm142_vm2, %v199_v23  ;;  %834 = vmatmul.msk.f32.vlgmr.msra.gmra.mxu3 %vm142_vm2, %v253_v24  ;;  %v479_v27 = vpop.permute.xlu2 %478 }
  0x8b   :  { %838 = vmatmul.msk.f32.gmra.mxu0 %vm142_vm2, %v311_v14  ;;  %860 = vmatpush.msk.msra.mxu3 %vm594_vm3, %v691_v22 }
  0x91   :  { %v257_v25 = vpop.permute.xlu1 %256  ;;  %v201_v26 = vpop.permute.xlu0 %200 }
  0x92   :  { %833 = vmatmul.msk.f32.gmra.mxu2 %vm142_vm2, %v201_v26  ;;  %835 = vmatmul.msk.f32.gmra.mxu3 %vm142_vm2, %v255_v13  ;;  %v425_v30 = vpop.permute.xlu2 %424  ;;  %v118_v42 = vpop.f32.mrf.mxu0 }
  0x93   :  { %839 = vmatmul.msk.f32.gmra.mxu0 %vm142_vm2, %v313_v15  ;;  %v119_v43 = vadd.f32 %v890_v39, %v118_v42  ;;  %v121_v44 = vpop.f32.mrf.mxu1 }
  0x94   :  { %v122_v45 = vadd.f32 %v890_v39, %v121_v44  ;;  %v898_v44 = vld [vmem:[%s1246_s6] ss:$0 sm:$0xff] }
  0x95   :  { %v127_v46 = vmax.f32 %v119_v43, 0.0 }
  0x96   :  { %v128_v48 = vmax.f32 %v122_v45, 0.0 }
  0x97   :  { %130 = vst [vmem:[#allocation8] sm:$0xff] %v127_v46  ;;  %v124_v49 = vpop.f32.mrf.mxu2 }
  0x98   :  { %131 = vst [vmem:[#allocation8 + $0x68] sm:$0xff] %v128_v48  ;;  %v125_v50 = vadd.f32 %v890_v39, %v124_v49 }
  0x99   :  { %v477_v28 = vpop.permute.xlu1 %476  ;;  %v421_v29 = vpop.permute.xlu0 %420 }
  0x9a   :  { %836 = vmatmul.msk.f32.gmra.mxu3 %vm142_vm2, %v257_v25  ;;  %843 = vmatmul.msk.f32.vlgmr.msra.gmra.mxu2 %vm142_vm2, %v421_v29  ;;  %v537_v35 = vpop.permute.xlu2 %536  ;;  %v129_v53 = vmax.f32 %v125_v50, 0.0 }
  0x9b   :  { %v169_v58 = vpop.f32.mrf.mxu1 }
  0x9c   :  { %132 = vst [vmem:[#allocation8 + $0xd0] sm:$0xff] %v129_v53  ;;  %v170_v59 = vadd.f32 %v892_v57, %v169_v58 }
  0x9e   :  { %v178_v60 = vmax.f32 %v170_v59, 0.0 }
  0xa0   :  { %181 = vst [vmem:[#allocation8 + $0x8] sm:$0xff] %v178_v60 }
  0xa1   :  { %v423_v31 = vpop.permute.xlu1 %422  ;;  %v533_v32 = vpop.permute.xlu0 %532 }
  0xa2   :  { %844 = vmatmul.msk.f32.gmra.mxu2 %vm142_vm2, %v423_v31  ;;  %846 = vmatmul.msk.f32.vlgmr.msrb.gmra.mxu3 %vm142_vm2, %v477_v28  ;;  %v758_v38 = vpop.permute.xlu2 %757 }
  0xa3   :  { %849 = vmatmul.msk.f32.vlgmr.msra.gmra.mxu0 %vm142_vm2, %v533_v32  ;;  %v172_v61 = vpop.f32.mrf.mxu1 }
  0xa4   :  { %v173_v62 = vadd.f32 %v892_v57, %v172_v61 }
  0xa6   :  { %v179_v63 = vmax.f32 %v173_v62, 0.0 }
  0xa8   :  { %182 = vst [vmem:[#allocation8 + $0x70] sm:$0xff] %v179_v63 }
  0xa9   :  { %v535_v33 = vpop.permute.xlu1 %534  ;;  %v367_v34 = vpop.permute.xlu0 %366 }
  0xaa   :  { %841 = vmatmul.msk.f32.gmra.mxu1 %vm142_vm2, %v367_v34  ;;  %847 = vmatmul.msk.f32.gmra.mxu3 %vm142_vm2, %v479_v27  ;;  %v760_v47 = vpop.permute.xlu2 %759  ;;  %v896_v34 = vld [vmem:[%s1246_s6] ss:$0 sm:$0xff] }
  0xab   :  { %850 = vmatmul.msk.f32.gmra.mxu0 %vm142_vm2, %v535_v33  ;;  %845 = vmatmul.msk.f32.gmra.mxu2 %vm142_vm2, %v425_v30  ;;  %v175_v0 = vpop.f32.mrf.mxu1 }
  0xac   :  { %v176_v1 = vadd.f32 %v892_v57, %v175_v0 }
  0xae   :  { %v180_v2 = vmax.f32 %v176_v1, 0.0 }
  0xb0   :  { %183 = vst [vmem:[#allocation8 + $0xd8] sm:$0xff] %v180_v2 }
  0xb1   :  { %v369_v36 = vpop.permute.xlu1 %368  ;;  %v481_v37 = vpop.permute.xlu0 %480 }
  0xb2   :  { %842 = vmatmul.msk.f32.gmra.mxu1 %vm142_vm2, %v369_v36  ;;  %848 = vmatmul.msk.f32.gmra.mxu3 %vm142_vm2, %v481_v37  ;;  %v762_v54 = vpop.permute.xlu2 %761  ;;  %v897_v37 = vld [vmem:[%s1246_s6] ss:$0 sm:$0xff] }
  0xb3   :  { %851 = vmatmul.msk.f32.gmra.mxu0 %vm142_vm2, %v537_v35 }
  0xb9   :  { %v700_v40 = vpop.permute.xlu1 %699  ;;  %v642_v41 = vpop.permute.xlu0 %641 }
  0xba   :  { %857 = vmatmul.msk.f32.vlgmr.msrb.gmra.mxu2 %vm584_vm4, %v642_v41  ;;  %861 = vmatmul.msk.f32.vlgmr.msra.gmra.mxu3 %vm584_vm4, %v700_v40 }
  0xbb   :  { %853 = vmatmul.msk.f32.vlgmr.msrb.gmra.mxu1 %vm584_vm4, %v1136_v9  ;;  %865 = vmatmul.msk.f32.vlgmr.msrb.gmra.mxu0 %vm584_vm4, %v758_v38 }
  0xc1   :  { %v702_v51 = vpop.permute.xlu1 %701  ;;  %v644_v52 = vpop.permute.xlu0 %643 }
  0xc2   :  { %858 = vmatmul.msk.f32.gmra.mxu2 %vm584_vm4, %v644_v52  ;;  %862 = vmatmul.msk.f32.gmra.mxu3 %vm584_vm4, %v702_v51 }
  0xc3   :  { %854 = vmatmul.msk.f32.gmra.mxu1 %vm584_vm4, %v1141_v10  ;;  %866 = vmatmul.msk.f32.gmra.mxu0 %vm584_vm4, %v760_v47  ;;  %v893_v10 = vld [vmem:[%s1246_s6] ss:$0 sm:$0xff] }
  0xc9   :  { %v704_v55 = vpop.permute.xlu1 %703  ;;  %v646_v56 = vpop.permute.xlu0 %645 }
  0xca   :  { %859 = vmatmul.msk.f32.gmra.mxu2 %vm584_vm4, %v646_v56  ;;  %863 = vmatmul.msk.f32.gmra.mxu3 %vm584_vm4, %v704_v55 }
  0xcb   :  { %855 = vmatmul.msk.f32.gmra.mxu1 %vm584_vm4, %v1146_v11  ;;  %867 = vmatmul.msk.f32.gmra.mxu0 %vm584_vm4, %v762_v54 }
  0xff   :  { %v337_v5 = vpop.f32.mrf.mxu0 }
 0x100   :  { %v338_v6 = vadd.f32 %v891_v3, %v337_v5  ;;  %v393_v7 = vpop.f32.mrf.mxu1 }
 0x101   :  { %v394_v8 = vadd.f32 %v1205_v4, %v393_v7 }
 0x102   :  { %v346_v9 = vmax.f32 %v338_v6, 0.0 }
 0x103   :  { %v402_v11 = vmax.f32 %v394_v8, 0.0  ;;  %v899_v8 = vld [vmem:[%s1248_s8] ss:$0 sm:$0xff] }
 0x104   :  { %349 = vst [vmem:[#allocation8 + $0x20] sm:$0xff] %v346_v9  ;;  %v902_v9 = vld [vmem:[%s1248_s8] ss:$0 sm:$0xff] }
 0x105   :  { %v225_v12 = vpop.f32.mrf.mxu2  ;;  %405 = vst [vmem:[#allocation8 + $0x28] sm:$0xff] %v402_v11 }
 0x106   :  { %v226_v13 = vadd.f32 %v893_v10, %v225_v12 }
 0x108   :  { %v234_v14 = vmax.f32 %v226_v13, 0.0  ;;  %v340_v15 = vpop.f32.mrf.mxu0 }
 0x109   :  { %v341_v16 = vadd.f32 %v891_v3, %v340_v15  ;;  %v900_v15 = vld [vmem:[%s1248_s8] ss:$0 sm:$0xff] }
 0x10a   :  { %237 = vst [vmem:[#allocation8 + $0x10] sm:$0xff] %v234_v14 }
 0x10b   :  { %v347_v18 = vmax.f32 %v341_v16, 0.0  ;;  %v901_v16 = vld [vmem:[%s1248_s8] ss:$0 sm:$0xff]  ;;  %s1020_s8 = smov [#allocation8]  }
 0x10c   :  { %s808_s3 = sshll.u32 %s1020_s8, 4  ;;  %s809_s3 = int_to_ptr.vmem [resolvable:$true] %s808_s3 }
 0x10d   :  { %v228_v19 = vpop.f32.mrf.mxu2  ;;  %v281_v20 = vpop.f32.mrf.mxu3  ;;  %350 = vst [vmem:[#allocation8 + $0x88] sm:$0xff] %v347_v18 }
 0x10e   :  { %v229_v21 = vadd.f32 %v893_v10, %v228_v19  ;;  %v282_v22 = vadd.f32 %v894_v17, %v281_v20 }
 0x110   :  { %v235_v23 = vmax.f32 %v229_v21, 0.0  ;;  %v290_v24 = vmax.f32 %v282_v22, 0.0  ;;  %v343_v25 = vpop.f32.mrf.mxu0 }
 0x111   :  { %v344_v26 = vadd.f32 %v891_v3, %v343_v25 }
 0x112   :  { %238 = vst [vmem:[#allocation8 + $0x78] sm:$0xff] %v235_v23 }
 0x113   :  { %293 = vst [vmem:[#allocation8 + $0x18] sm:$0xff] %v290_v24  ;;  %v348_v27 = vmax.f32 %v344_v26, 0.0 }
 0x115   :  { %v231_v28 = vpop.f32.mrf.mxu2  ;;  %v284_v29 = vpop.f32.mrf.mxu3  ;;  %351 = vst [vmem:[#allocation8 + $0xf0] sm:$0xff] %v348_v27 }
 0x116   :  { %v232_v30 = vadd.f32 %v893_v10, %v231_v28  ;;  %v285_v31 = vadd.f32 %v894_v17, %v284_v29 }
 0x118   :  { %v236_v32 = vmax.f32 %v232_v30, 0.0  ;;  %v291_v33 = vmax.f32 %v285_v31, 0.0 }
 0x11a   :  { %239 = vst [vmem:[#allocation8 + $0xe0] sm:$0xff] %v236_v32 }
 0x11b   :  { %294 = vst [vmem:[#allocation8 + $0x80] sm:$0xff] %v291_v33 }
 0x11d   :  { %v287_v35 = vpop.f32.mrf.mxu3  ;;  %v449_v36 = vpop.f32.mrf.mxu2 }
 0x11e   :  { %v288_v38 = vadd.f32 %v894_v17, %v287_v35  ;;  %v450_v39 = vadd.f32 %v896_v34, %v449_v36 }
 0x120   :  { %v292_v40 = vmax.f32 %v288_v38, 0.0  ;;  %v458_v41 = vmax.f32 %v450_v39, 0.0  ;;  %v561_v42 = vpop.f32.mrf.mxu0 }
 0x121   :  { %v562_v43 = vadd.f32 %v897_v37, %v561_v42 }
 0x122   :  { %295 = vst [vmem:[#allocation8 + $0xe8] sm:$0xff] %v292_v40 }
 0x123   :  { %461 = vst [vmem:[#allocation8 + $0x30] sm:$0xff] %v458_v41  ;;  %v570_v45 = vmax.f32 %v562_v43, 0.0 }
 0x125   :  { %573 = vst [vmem:[#allocation8 + $0x40] sm:$0xff] %v570_v45  ;;  %v452_v46 = vpop.f32.mrf.mxu2  ;;  %v505_v47 = vpop.f32.mrf.mxu3 }
 0x126   :  { %v453_v48 = vadd.f32 %v896_v34, %v452_v46  ;;  %v506_v49 = vadd.f32 %v898_v44, %v505_v47 }
 0x127   :  { %v396_v50 = vpop.f32.mrf.mxu1 }
 0x128   :  { %v459_v51 = vmax.f32 %v453_v48, 0.0  ;;  %v514_v52 = vmax.f32 %v506_v49, 0.0  ;;  %v397_v53 = vadd.f32 %v1205_v4, %v396_v50  ;;  %v564_v54 = vpop.f32.mrf.mxu0 }
 0x129   :  { %v565_v55 = vadd.f32 %v897_v37, %v564_v54 }
 0x12a   :  { %462 = vst [vmem:[#allocation8 + $0x98] sm:$0xff] %v459_v51  ;;  %v403_v56 = vmax.f32 %v397_v53, 0.0 }
 0x12b   :  { %517 = vst [vmem:[#allocation8 + $0x38] sm:$0xff] %v514_v52  ;;  %v571_v57 = vmax.f32 %v565_v55, 0.0 }
 0x12c   :  { %406 = vst [vmem:[#allocation8 + $0x90] sm:$0xff] %v403_v56 }
 0x12d   :  { %574 = vst [vmem:[#allocation8 + $0xa8] sm:$0xff] %v571_v57  ;;  %v508_v58 = vpop.f32.mrf.mxu3 }
 0x12e   :  { %v509_v59 = vadd.f32 %v898_v44, %v508_v58  ;;  %v455_v60 = vpop.f32.mrf.mxu2 }
 0x12f   :  { %v399_v61 = vpop.f32.mrf.mxu1  ;;  %v456_v62 = vadd.f32 %v896_v34, %v455_v60 }
 0x130   :  { %v515_v63 = vmax.f32 %v509_v59, 0.0  ;;  %v400_v0 = vadd.f32 %v1205_v4, %v399_v61  ;;  %v567_v1 = vpop.f32.mrf.mxu0 }
 0x131   :  { %v460_v2 = vmax.f32 %v456_v62, 0.0  ;;  %v568_v3 = vadd.f32 %v897_v37, %v567_v1 }
 0x132   :  { %518 = vst [vmem:[#allocation8 + $0xa0] sm:$0xff] %v515_v63  ;;  %v404_v5 = vmax.f32 %v400_v0, 0.0 }
 0x133   :  { %463 = vst [vmem:[#allocation8 + $0x100] sm:$0xff] %v460_v2  ;;  %v572_v6 = vmax.f32 %v568_v3, 0.0 }
 0x134   :  { %407 = vst [vmem:[#allocation8 + $0xf8] sm:$0xff] %v404_v5 }
 0x135   :  { %v511_v7 = vpop.f32.mrf.mxu3  ;;  %575 = vst [vmem:[#allocation8 + $0x110] sm:$0xff] %v572_v6 }
 0x136   :  { %v512_v10 = vadd.f32 %v898_v44, %v511_v7 }
 0x138   :  { %v516_v4 = vmax.f32 %v512_v10, 0.0  ;;  %v615_v11 = vpop.f32.mrf.mxu1  ;;  %v789_v12 = vpop.f32.mrf.mxu0 }
 0x139   :  { %v616_v13 = vadd.f32 %v899_v8, %v615_v11  ;;  %v790_v14 = vadd.f32 %v902_v9, %v789_v12 }
 0x13a   :  { %519 = vst [vmem:[#allocation8 + $0x108] sm:$0xff] %v516_v4 }
 0x13b   :  { %v624_v17 = vmax.f32 %v616_v13, 0.0  ;;  %v798_v18 = vmax.f32 %v790_v14, 0.0 }
 0x13d   :  { %627 = vst [vmem:[#allocation8 + $0x48] sm:$0xff] %v624_v17  ;;  %v673_v19 = vpop.f32.mrf.mxu2  ;;  %v731_v20 = vpop.f32.mrf.mxu3 }
 0x13e   :  { %v674_v21 = vadd.f32 %v900_v15, %v673_v19  ;;  %v732_v22 = vadd.f32 %v901_v16, %v731_v20  ;;  %801 = vst [vmem:[#allocation8 + $0x60] sm:$0xff] %v798_v18 }
 0x140   :  { %v682_v23 = vmax.f32 %v674_v21, 0.0  ;;  %v740_v24 = vmax.f32 %v732_v22, 0.0  ;;  %v618_v25 = vpop.f32.mrf.mxu1  ;;  %v792_v26 = vpop.f32.mrf.mxu0 }
 0x141   :  { %v619_v27 = vadd.f32 %v899_v8, %v618_v25  ;;  %v793_v28 = vadd.f32 %v902_v9, %v792_v26 }
 0x142   :  { %685 = vst [vmem:[#allocation8 + $0x50] sm:$0xff] %v682_v23 }
 0x143   :  { %743 = vst [vmem:[#allocation8 + $0x58] sm:$0xff] %v740_v24  ;;  %v625_v29 = vmax.f32 %v619_v27, 0.0  ;;  %v799_v30 = vmax.f32 %v793_v28, 0.0 }
 0x145   :  { %628 = vst [vmem:[#allocation8 + $0xb0] sm:$0xff] %v625_v29  ;;  %v676_v31 = vpop.f32.mrf.mxu2  ;;  %v734_v32 = vpop.f32.mrf.mxu3 }
 0x146   :  { %v677_v33 = vadd.f32 %v900_v15, %v676_v31  ;;  %v735_v34 = vadd.f32 %v901_v16, %v734_v32  ;;  %802 = vst [vmem:[#allocation8 + $0xc8] sm:$0xff] %v799_v30 }
 0x148   :  { %v683_v35 = vmax.f32 %v677_v33, 0.0  ;;  %v741_v36 = vmax.f32 %v735_v34, 0.0  ;;  %v621_v37 = vpop.f32.mrf.mxu1  ;;  %v795_v38 = vpop.f32.mrf.mxu0 }
 0x149   :  { %v622_v39 = vadd.f32 %v899_v8, %v621_v37  ;;  %v796_v40 = vadd.f32 %v902_v9, %v795_v38 }
 0x14a   :  { %686 = vst [vmem:[#allocation8 + $0xb8] sm:$0xff] %v683_v35 }
 0x14b   :  { %744 = vst [vmem:[#allocation8 + $0xc0] sm:$0xff] %v741_v36  ;;  %v626_v41 = vmax.f32 %v622_v39, 0.0  ;;  %v800_v42 = vmax.f32 %v796_v40, 0.0 }
 0x14d   :  { %629 = vst [vmem:[#allocation8 + $0x118] sm:$0xff] %v626_v41  ;;  %v679_v43 = vpop.f32.mrf.mxu2  ;;  %v737_v44 = vpop.f32.mrf.mxu3 }
 0x14e   :  { %v680_v45 = vadd.f32 %v900_v15, %v679_v43  ;;  %v738_v46 = vadd.f32 %v901_v16, %v737_v44  ;;  %803 = vst [vmem:[#allocation8 + $0x130] sm:$0xff] %v800_v42 }
 0x150   :  { %v684_v47 = vmax.f32 %v680_v45, 0.0  ;;  %v742_v48 = vmax.f32 %v738_v46, 0.0 }
 0x152   :  { %687 = vst [vmem:[#allocation8 + $0x120] sm:$0xff] %v684_v47 }
 0x153   :  { %745 = vst [vmem:[#allocation8 + $0x128] sm:$0xff] %v742_v48 }
 0x154   :  { %816 = dma.vmem_to_hbm [thread:$0]  %s809_s3, 4992, %s811_s24, [#allocation4], %s1021_s2, %s1021_s2, %s1022_s4  }
 0x155   :  { %1003 = dma.done.wait [#allocation4], 4992  }
 0x156   :  { %1004 = vsyncadd [#allocation4], 4294962304 }
 0x157   :  { %821 = vsyncpa [#allocation3], 1 }
 0x158   :  { %822 = vsyncpa [#allocation6], 1 }
 0x159   :  { %823 = vsyncpa [#allocation4], 1 }

</bundles_post_ra>
